<compile_context>
chip_gen: v5e
topology: v5e:2x2
jax: 0.10.0
libtpu: 0.0.40
codegen_flags: <defaults>
</compile_context>

<pallas_src>
import functools

import jax
import jax.numpy as jnp
from jax.experimental import pallas as pl
from jax.experimental.pallas import tpu as pltpu

K_IN = 784     # 28 * 28 contraction dim of layer 1 (un-padded)
FEATS = 128    # model width
N_PAD = 128    # lane-dense padded width of the final (10-wide) layer


def _mlp_kernel(x_ref, w1_ref, b1_ref, w2_ref, b2_ref, w3_ref, b3_ref, o_ref):
    # Fused input cast: raw f32 rows -> bf16 in-register (no extra HBM pass).
    x = x_ref[...].astype(jnp.bfloat16)
    # Layer 1: 784 -> 128, ReLU.  bf16 MXU matmul, f32 accumulate/epilogue.
    h = jnp.dot(x, w1_ref[...], preferred_element_type=jnp.float32)
    h = jnp.maximum(h + b1_ref[...], 0.0)
    # Hidden layer: 128 -> 128, ReLU.
    h = jnp.dot(h.astype(jnp.bfloat16), w2_ref[...],
                preferred_element_type=jnp.float32)
    h = jnp.maximum(h + b2_ref[...], 0.0)
    # Final layer: 128 -> 128 (padded; cols 10..127 are zero weights/bias).
    out = jnp.dot(h.astype(jnp.bfloat16), w3_ref[...],
                  preferred_element_type=jnp.float32)
    o_ref[...] = (out + b3_ref[...]).astype(o_ref.dtype)


def _pad_cast_params(params):
    """Pad the final layer 10->128 lanes with zeros; cast weights to bf16."""
    w1, b1, w2, b2, w3, b3 = params
    n_out = w3.shape[1]
    w3p = jnp.pad(w3, ((0, 0), (0, N_PAD - n_out)))
    b3p = jnp.pad(b3, ((0, 0), (0, N_PAD - n_out)))
    return (w1.astype(jnp.bfloat16), b1.astype(jnp.float32),
            w2.astype(jnp.bfloat16), b2.astype(jnp.float32),
            w3p.astype(jnp.bfloat16), b3p.astype(jnp.float32)), n_out


def _round_up(n, m):
    return (n + m - 1) // m * m


def _pick_batch_tile(B, batch_tile):
    """Large tiles to amortize per-step overhead / fill the MXU, but keep
    >= 2 grid steps for big batches so v7x's two TensorCores both get work."""
    if B <= 256:
        # One block covering the whole batch: block dims == array dims, so no
        # (8,128) divisibility constraint applies and nothing is wasted.
        return B
    tile = min(batch_tile, _round_up(pl.cdiv(B, 2), 8))
    return max(tile, 8)


@functools.partial(jax.jit, static_argnames=("batch_tile",))
def mlp_forward(x_nchw, params, *, batch_tile=512):
    """Forward pass of the MLP. x_nchw: (B, 1, 28, 28) float32 -> (B, 10) f32."""
    B = x_nchw.shape[0]
    (w1, b1, w2, b2, w3, b3), n_out = _pad_cast_params(params)

    # Free view under jit (same as torch .view(B, -1)); raw f32 rows feed the
    # kernel directly, the bf16 cast happens in-register inside the kernel.
    x = x_nchw.reshape(B, K_IN)

    tile = _pick_batch_tile(B, batch_tile)
    grid_b = pl.cdiv(B, tile)           # ragged last tile handled by masking

    def const_spec(arr):
        # Whole-array block; same block every grid step -> stays VMEM-resident.
        return pl.BlockSpec(arr.shape, lambda i: (0,) * arr.ndim)

    out = pl.pallas_call(
        _mlp_kernel,
        out_shape=jax.ShapeDtypeStruct((B, N_PAD), jnp.bfloat16),
        grid=(grid_b,),
        in_specs=[pl.BlockSpec((tile, K_IN), lambda i: (i, 0)),
                  const_spec(w1), const_spec(b1),
                  const_spec(w2), const_spec(b2),
                  const_spec(w3), const_spec(b3)],
        out_specs=pl.BlockSpec((tile, N_PAD), lambda i: (i, 0)),
        compiler_params=pltpu.CompilerParams(
            dimension_semantics=("parallel",)),
    )(x, w1, b1, w2, b2, w3, b3)

    # Strip lane padding back to the true 10 logits; return f32 like the module.
    # TODO(synk): optional fp8 (e4m3) activation/weight path for v7x only.
    return out[:, :n_out].astype(jnp.float32)


def init_params(key, features=FEATS, in_features=K_IN, out_features=10,
                hidden_layers=1):
    """Deterministic init mirroring nn.Linear's U(-1/sqrt(fan_in), 1/sqrt(fan_in)).

    Weights stored as (in, out), unpadded f32; padding/bf16 cast happens in
    mlp_forward so the reference path can stay in full precision.
    """
    assert hidden_layers == 1  # TODO(synk): generalize kernel to N hidden layers
    keys = jax.random.split(key, 6)

    def lin(kw, kb, fan_in, fan_out):
        bound = 1.0 / jnp.sqrt(fan_in)
        w = jax.random.uniform(kw, (fan_in, fan_out), jnp.float32, -bound, bound)
        b = jax.random.uniform(kb, (1, fan_out), jnp.float32, -bound, bound)
        return w, b

    w1, b1 = lin(keys[0], keys[1], in_features, features)
    w2, b2 = lin(keys[2], keys[3], features, features)
    w3, b3 = lin(keys[4], keys[5], features, out_features)
    return (w1, b1, w2, b2, w3, b3)


def _reference(x_nchw, params):
    """Plain-JAX f32 forward pass, same semantics as the PyTorch module."""
    w1, b1, w2, b2, w3, b3 = params
    xf = x_nchw.reshape(x_nchw.shape[0], -1)
    h = jnp.maximum(xf @ w1 + b1, 0.0)
    h = jnp.maximum(h @ w2 + b2, 0.0)
    return h @ w3 + b3


if __name__ == "__main__":
    key = jax.random.PRNGKey(0)
    k_x1, k_x2, k_p = jax.random.split(key, 3)

    params = init_params(k_p, features=FEATS)

    # Case 1: small batch (B=8) -> single full-batch block.
    B1 = 8
    x1 = jax.random.normal(k_x1, (B1, 1, 28, 28), dtype=jnp.float32)
    out1 = jax.block_until_ready(mlp_forward(x1, params))
    ref1 = _reference(x1, params)
    assert out1.shape == (B1, 10)
    # bf16 weights/activations/store -> loosened tolerance vs f32 reference.
    assert jnp.allclose(out1, ref1, atol=5e-2, rtol=5e-2)

    # Case 2: larger batch (B=256) -> batch-gridded path (2 parallel steps),
    # weights VMEM-resident across steps.
    B2 = 256
    x2 = jax.random.normal(k_x2, (B2, 1, 28, 28), dtype=jnp.float32)
    out2 = jax.block_until_ready(mlp_forward(x2, params))
    ref2 = _reference(x2, params)
    assert out2.shape == (B2, 10)
    assert jnp.allclose(out2, ref2, atol=5e-2, rtol=5e-2)

    print("KERNEL_OK")
</pallas_src>

<mosaic_0001>
module attributes {stable_mosaic.version = 11 : i64} {
  func.func @_mlp_kernel(%arg0: i32, %arg1: memref<8x784xf32, #tpu.memory_space<vmem>>, %arg2: memref<784x128xbf16, #tpu.memory_space<vmem>>, %arg3: memref<1x128xf32, #tpu.memory_space<vmem>>, %arg4: memref<128x128xbf16, #tpu.memory_space<vmem>>, %arg5: memref<1x128xf32, #tpu.memory_space<vmem>>, %arg6: memref<128x128xbf16, #tpu.memory_space<vmem>>, %arg7: memref<1x128xf32, #tpu.memory_space<vmem>>, %arg8: memref<8x128xbf16, #tpu.memory_space<vmem>>) attributes {dimension_semantics = [#tpu.dimension_semantics<parallel>], iteration_bounds = array<i64: 1>, scalar_prefetch = 0 : i64, scratch_operands = 0 : i64, tpu.core_type = #tpu.core_type<tc>, window_params = [{transform_indices = @transform_0, window_bounds = array<i64: 8, 784>}, {pipeline_mode = #tpu.pipeline_mode<synchronous>, transform_indices = @transform_1, window_bounds = array<i64: 784, 128>}, {pipeline_mode = #tpu.pipeline_mode<synchronous>, transform_indices = @transform_2, window_bounds = array<i64: 1, 128>}, {pipeline_mode = #tpu.pipeline_mode<synchronous>, transform_indices = @transform_3, window_bounds = array<i64: 128, 128>}, {pipeline_mode = #tpu.pipeline_mode<synchronous>, transform_indices = @transform_4, window_bounds = array<i64: 1, 128>}, {pipeline_mode = #tpu.pipeline_mode<synchronous>, transform_indices = @transform_5, window_bounds = array<i64: 128, 128>}, {pipeline_mode = #tpu.pipeline_mode<synchronous>, transform_indices = @transform_6, window_bounds = array<i64: 1, 128>}, {transform_indices = @transform_7, window_bounds = array<i64: 8, 128>}]} {
    %c0 = arith.constant 0 : index
    %c0_0 = arith.constant 0 : index
    %0 = vector.load %arg1[%c0, %c0_0] : memref<8x784xf32, #tpu.memory_space<vmem>>, vector<8x784xf32>
    %1 = arith.truncf %0 : vector<8x784xf32> to vector<8x784xbf16>
    %c0_1 = arith.constant 0 : index
    %c0_2 = arith.constant 0 : index
    %2 = vector.load %arg2[%c0_1, %c0_2] : memref<784x128xbf16, #tpu.memory_space<vmem>>, vector<784x128xbf16>
    %cst = arith.constant dense<0.000000e+00> : vector<8x128xf32>
    %3 = tpu.matmul %1, %2, %cst {dimension_numbers = #tpu.dot_dimension_numbers<[1], [0], [0], [1], [0, 0, 1, 1], [], []>} : vector<8x784xbf16>, vector<784x128xbf16>, vector<8x128xf32> -> vector<8x128xf32>
    %c0_3 = arith.constant 0 : index
    %c0_4 = arith.constant 0 : index
    %4 = vector.load %arg3[%c0_3, %c0_4] : memref<1x128xf32, #tpu.memory_space<vmem>>, vector<1x128xf32>
    %5 = vector.broadcast %4 : vector<1x128xf32> to vector<8x128xf32>
    %6 = arith.addf %3, %5 : vector<8x128xf32>
    %cst_5 = arith.constant 0.000000e+00 : f32
    %7 = vector.broadcast %cst_5 : f32 to vector<8x128xf32>
    %8 = arith.maximumf %6, %7 : vector<8x128xf32>
    %9 = arith.truncf %8 : vector<8x128xf32> to vector<8x128xbf16>
    %c0_6 = arith.constant 0 : index
    %c0_7 = arith.constant 0 : index
    %10 = vector.load %arg4[%c0_6, %c0_7] : memref<128x128xbf16, #tpu.memory_space<vmem>>, vector<128x128xbf16>
    %cst_8 = arith.constant dense<0.000000e+00> : vector<8x128xf32>
    %11 = tpu.matmul %9, %10, %cst_8 {dimension_numbers = #tpu.dot_dimension_numbers<[1], [0], [0], [1], [0, 0, 1, 1], [], []>} : vector<8x128xbf16>, vector<128x128xbf16>, vector<8x128xf32> -> vector<8x128xf32>
    %c0_9 = arith.constant 0 : index
    %c0_10 = arith.constant 0 : index
    %12 = vector.load %arg5[%c0_9, %c0_10] : memref<1x128xf32, #tpu.memory_space<vmem>>, vector<1x128xf32>
    %13 = vector.broadcast %12 : vector<1x128xf32> to vector<8x128xf32>
    %14 = arith.addf %11, %13 : vector<8x128xf32>
    %cst_11 = arith.constant 0.000000e+00 : f32
    %15 = vector.broadcast %cst_11 : f32 to vector<8x128xf32>
    %16 = arith.maximumf %14, %15 : vector<8x128xf32>
    %17 = arith.truncf %16 : vector<8x128xf32> to vector<8x128xbf16>
    %c0_12 = arith.constant 0 : index
    %c0_13 = arith.constant 0 : index
    %18 = vector.load %arg6[%c0_12, %c0_13] : memref<128x128xbf16, #tpu.memory_space<vmem>>, vector<128x128xbf16>
    %cst_14 = arith.constant dense<0.000000e+00> : vector<8x128xf32>
    %19 = tpu.matmul %17, %18, %cst_14 {dimension_numbers = #tpu.dot_dimension_numbers<[1], [0], [0], [1], [0, 0, 1, 1], [], []>} : vector<8x128xbf16>, vector<128x128xbf16>, vector<8x128xf32> -> vector<8x128xf32>
    %c0_15 = arith.constant 0 : index
    %c0_16 = arith.constant 0 : index
    %20 = vector.load %arg7[%c0_15, %c0_16] : memref<1x128xf32, #tpu.memory_space<vmem>>, vector<1x128xf32>
    %21 = vector.broadcast %20 : vector<1x128xf32> to vector<8x128xf32>
    %22 = arith.addf %19, %21 : vector<8x128xf32>
    %23 = arith.truncf %22 : vector<8x128xf32> to vector<8x128xbf16>
    %c0_17 = arith.constant 0 : index
    %c0_18 = arith.constant 0 : index
    %24 = vector.load %arg8[%c0_17, %c0_18] : memref<8x128xbf16, #tpu.memory_space<vmem>>, vector<8x128xbf16>
    tpu.vector_store %arg8[%c0_17, %c0_18], %23 {strides = array<i32>} : memref<8x128xbf16, #tpu.memory_space<vmem>>, vector<8x128xbf16>,
    return
  }
  func.func @transform_0(%arg0: i32) -> (i32, i32) {
    %c0_i32 = arith.constant 0 : i32
    %c0_i32_0 = arith.constant 0 : i32
    return %arg0, %c0_i32 : i32, i32
  }
  func.func @transform_1(%arg0: i32) -> (i32, i32) {
    %c0_i32 = arith.constant 0 : i32
    %c0_i32_0 = arith.constant 0 : i32
    %c0_i32_1 = arith.constant 0 : i32
    return %c0_i32, %c0_i32_0 : i32, i32
  }
  func.func @transform_2(%arg0: i32) -> (i32, i32) {
    %c0_i32 = arith.constant 0 : i32
    %c0_i32_0 = arith.constant 0 : i32
    %c0_i32_1 = arith.constant 0 : i32
    return %c0_i32, %c0_i32_0 : i32, i32
  }
  func.func @transform_3(%arg0: i32) -> (i32, i32) {
    %c0_i32 = arith.constant 0 : i32
    %c0_i32_0 = arith.constant 0 : i32
    %c0_i32_1 = arith.constant 0 : i32
    return %c0_i32, %c0_i32_0 : i32, i32
  }
  func.func @transform_4(%arg0: i32) -> (i32, i32) {
    %c0_i32 = arith.constant 0 : i32
    %c0_i32_0 = arith.constant 0 : i32
    %c0_i32_1 = arith.constant 0 : i32
    return %c0_i32, %c0_i32_0 : i32, i32
  }
  func.func @transform_5(%arg0: i32) -> (i32, i32) {
    %c0_i32 = arith.constant 0 : i32
    %c0_i32_0 = arith.constant 0 : i32
    %c0_i32_1 = arith.constant 0 : i32
    return %c0_i32, %c0_i32_0 : i32, i32
  }
  func.func @transform_6(%arg0: i32) -> (i32, i32) {
    %c0_i32 = arith.constant 0 : i32
    %c0_i32_0 = arith.constant 0 : i32
    %c0_i32_1 = arith.constant 0 : i32
    return %c0_i32, %c0_i32_0 : i32, i32
  }
  func.func @transform_7(%arg0: i32) -> (i32, i32) {
    %c0_i32 = arith.constant 0 : i32
    %c0_i32_0 = arith.constant 0 : i32
    return %arg0, %c0_i32 : i32, i32
  }
}

</mosaic_0001>

<bundles_post_ra>
// kernel: mlp_forward.1
= control target key start
LH: loop header
LB: loop body
LE: loop exit
PB: predicated region body
PF: predicated region fallthrough
CT: control target
= control target key end

     0   :  { %vm437_vm0 = vcmask 130048   ;;  %s1301_s1 = inlined_call_operand.vmem [shape: bf16[784,128], index: 1, kind: input, shape index: {}]   ;;  %s1302_s2 = inlined_call_operand.vmem [shape: f32[1,128], index: 2, kind: input, shape index: {}]   ;;  %s1303_s0 = inlined_call_operand.vmem [shape: f32[8,784], index: 0, kind: input, shape index: {}]   ;;  %s1304_s4 = inlined_call_operand.vmem [shape: f32[1,128], index: 4, kind: input, shape index: {}]   ;;  %s1305_s3 = inlined_call_operand.vmem [shape: bf16[128,128], index: 3, kind: input, shape index: {}]   ;;  %s1306_s5 = inlined_call_operand.vmem [shape: bf16[128,128], index: 5, kind: input, shape index: {}]   ;;  %s1307_s6 = inlined_call_operand.vmem [shape: f32[1,128], index: 6, kind: input, shape index: {}]   ;;  %s1308_s7 = inlined_call_operand.vmem [shape: bf16[8,128], index: 7, kind: output, shape index: {}]  }
   0x1   :  { %v972_v0 = vld [vmem:[%s1301_s1 + $0x38] sm:$0xff]  ;;  %v971_v3 = vld [vmem:[%s1301_s1 + $0x30] sm:$0xff]  ;;  %v970_v8 = vld [vmem:[%s1301_s1 + $0x28] sm:$0xff] }
   0x2   :  { %v980_v1 = vld [vmem:[%s1301_s1 + $0x78] sm:$0xff]  ;;  %441 = vmatpush.bf16.msra.mxu0 %v972_v0  ;;  %v979_v4 = vld [vmem:[%s1301_s1 + $0x70] sm:$0xff]  ;;  %v978_v9 = vld [vmem:[%s1301_s1 + $0x68] sm:$0xff] }
   0x3   :  { %v988_v2 = vld [vmem:[%s1301_s1 + $0xb8] sm:$0xff]  ;;  %454 = vmatpush.bf16.msra.mxu1 %v980_v1  ;;  %v987_v5 = vld [vmem:[%s1301_s1 + $0xb0] sm:$0xff]  ;;  %v986_v10 = vld [vmem:[%s1301_s1 + $0xa8] sm:$0xff] }
   0x4   :  { %467 = vmatpush.bf16.msra.mxu2 %v988_v2  ;;  %v996_v6 = vld [vmem:[%s1301_s1 + $0xf8] sm:$0xff]  ;;  %v995_v7 = vld [vmem:[%s1301_s1 + $0xf0] sm:$0xff]  ;;  %v994_v11 = vld [vmem:[%s1301_s1 + $0xe8] sm:$0xff] }
   0x5   :  { %480 = vmatpush.bf16.msra.mxu3 %v996_v6  ;;  %v969_v12 = vld [vmem:[%s1301_s1 + $0x20] sm:$0xff]  ;;  %v968_v16 = vld [vmem:[%s1301_s1 + $0x18] sm:$0xff]  ;;  %v967_v20 = vld [vmem:[%s1301_s1 + $0x10] sm:$0xff] }
   0x6   :  { %442 = vmatpush.bf16.msra.mxu0 %v971_v3  ;;  %v977_v13 = vld [vmem:[%s1301_s1 + $0x60] sm:$0xff]  ;;  %v976_v17 = vld [vmem:[%s1301_s1 + $0x58] sm:$0xff]  ;;  %v975_v21 = vld [vmem:[%s1301_s1 + $0x50] sm:$0xff] }
   0x7   :  { %455 = vmatpush.bf16.msra.mxu1 %v979_v4  ;;  %v985_v14 = vld [vmem:[%s1301_s1 + $0xa0] sm:$0xff]  ;;  %v984_v18 = vld [vmem:[%s1301_s1 + $0x98] sm:$0xff]  ;;  %v983_v22 = vld [vmem:[%s1301_s1 + $0x90] sm:$0xff] }
   0x8   :  { %468 = vmatpush.bf16.msra.mxu2 %v987_v5  ;;  %v993_v15 = vld [vmem:[%s1301_s1 + $0xe0] sm:$0xff]  ;;  %v992_v19 = vld [vmem:[%s1301_s1 + $0xd8] sm:$0xff]  ;;  %v991_v23 = vld [vmem:[%s1301_s1 + $0xd0] sm:$0xff] }
   0x9   :  { %481 = vmatpush.bf16.msra.mxu3 %v995_v7  ;;  %v966_v24 = vld [vmem:[%s1301_s1 + $0x8] sm:$0xff]  ;;  %v965_v27 = vld [vmem:[%s1301_s1] sm:$0xff]  ;;  %v1004_v32 = vld [vmem:[%s1301_s1 + $0x138] sm:$0xff] }
   0xa   :  { %443 = vmatpush.bf16.msra.mxu0 %v970_v8  ;;  %v974_v25 = vld [vmem:[%s1301_s1 + $0x48] sm:$0xff]  ;;  %v973_v29 = vld [vmem:[%s1301_s1 + $0x40] sm:$0xff]  ;;  %v1012_v33 = vld [vmem:[%s1301_s1 + $0x178] sm:$0xff] }
   0xb   :  { %456 = vmatpush.bf16.msra.mxu1 %v978_v9  ;;  %v982_v26 = vld [vmem:[%s1301_s1 + $0x88] sm:$0xff]  ;;  %v27_v30 = vld [vmem:[%s1303_s0] sm:$0xff]  ;;  %v29_v35 = vld [vmem:[%s1303_s0 + $0x10] sm:$0xff] }
   0xc   :  { %469 = vmatpush.bf16.msra.mxu2 %v986_v10  ;;  %v990_v28 = vld [vmem:[%s1301_s1 + $0xc8] sm:$0xff]  ;;  %v981_v34 = vld [vmem:[%s1301_s1 + $0x80] sm:$0xff]  ;;  %v34_v36 = vpack.c.bf16 %v27_v30, %v27_v30  ;;  %v30_v40 = vld [vmem:[%s1303_s0 + $0x18] sm:$0xff]  ;;  %v36_v43 = vpack.c.bf16 %v29_v35, %v29_v35 }
   0xd   :  { %482 = vmatpush.bf16.msra.mxu3 %v994_v11  ;;  %v28_v31 = vld [vmem:[%s1303_s0 + $0x8] sm:$0xff]  ;;  %v989_v38 = vld [vmem:[%s1301_s1 + $0xc0] sm:$0xff]  ;;  %v1003_v41 = vld [vmem:[%s1301_s1 + $0x130] sm:$0xff]  ;;  %v37_v44 = vpack.c.bf16 %v30_v40, %v30_v40 }
   0xe   :  { %444 = vmatpush.bf16.msra.mxu0 %v969_v12  ;;  %v35_v37 = vpack.c.bf16 %v28_v31, %v28_v31  ;;  %v1013_v39 = vld [vmem:[%s1301_s1 + $0x180] sm:$0xff]  ;;  %v1011_v42 = vld [vmem:[%s1301_s1 + $0x170] sm:$0xff]  ;;  %v1002_v45 = vld [vmem:[%s1301_s1 + $0x128] sm:$0xff] }
   0xf   :  { %457 = vmatpush.bf16.msra.mxu1 %v977_v13  ;;  %v1010_v46 = vld [vmem:[%s1301_s1 + $0x168] sm:$0xff]  ;;  %v1001_v47 = vld [vmem:[%s1301_s1 + $0x120] sm:$0xff]  ;;  %v1000_v49 = vld [vmem:[%s1301_s1 + $0x118] sm:$0xff] }
  0x10   :  { %470 = vmatpush.bf16.msra.mxu2 %v985_v14  ;;  %v1009_v48 = vld [vmem:[%s1301_s1 + $0x160] sm:$0xff]  ;;  %v1008_v50 = vld [vmem:[%s1301_s1 + $0x158] sm:$0xff]  ;;  %v33_v51 = vld [vmem:[%s1303_s0 + $0x30] sm:$0xff] }
  0x11   :  { %483 = vmatpush.bf16.msra.mxu3 %v993_v15  ;;  %v999_v52 = vld [vmem:[%s1301_s1 + $0x110] sm:$0xff]  ;;  %v40_v54 = vpack.c.bf16 %v33_v51, %v33_v51  ;;  %v998_v55 = vld [vmem:[%s1301_s1 + $0x108] sm:$0xff]  ;;  %v997_v57 = vld [vmem:[%s1301_s1 + $0x100] sm:$0xff] }
  0x12   :  { %445 = vmatpush.bf16.msra.mxu0 %v968_v16  ;;  %v1007_v53 = vld [vmem:[%s1301_s1 + $0x150] sm:$0xff]  ;;  %v1006_v56 = vld [vmem:[%s1301_s1 + $0x148] sm:$0xff]  ;;  %v1005_v58 = vld [vmem:[%s1301_s1 + $0x140] sm:$0xff] }
  0x13   :  { %458 = vmatpush.bf16.msra.mxu1 %v976_v17  ;;  %v31_v59 = vld [vmem:[%s1303_s0 + $0x20] sm:$0xff]  ;;  %v32_v60 = vld [vmem:[%s1303_s0 + $0x28] sm:$0xff]  ;;  %v1021_v63 = vld [vmem:[%s1305_s3 + $0x38] sm:$0xff] }
  0x14   :  { %471 = vmatpush.bf16.msra.mxu2 %v984_v18  ;;  %v38_v61 = vpack.c.bf16 %v31_v59, %v31_v59  ;;  %v39_v62 = vpack.c.bf16 %v32_v60, %v32_v60  ;;  %v1020_v0 = vld [vmem:[%s1305_s3 + $0x30] sm:$0xff]  ;;  %v1019_v1 = vld [vmem:[%s1305_s3 + $0x28] sm:$0xff]  ;;  %v1018_v2 = vld [vmem:[%s1305_s3 + $0x20] sm:$0xff] }
  0x15   :  { %484 = vmatpush.bf16.msra.mxu3 %v992_v19  ;;  %v1017_v3 = vld [vmem:[%s1305_s3 + $0x18] sm:$0xff]  ;;  %v1016_v4 = vld [vmem:[%s1305_s3 + $0x10] sm:$0xff]  ;;  %v1015_v5 = vld [vmem:[%s1305_s3 + $0x8] sm:$0xff] }
  0x16   :  { %446 = vmatpush.bf16.msra.mxu0 %v967_v20  ;;  %v1014_v8 = vld [vmem:[%s1305_s3] sm:$0xff]  ;;  %v1029_v11 = vld [vmem:[%s1306_s5 + $0x38] sm:$0xff]  ;;  %v1028_v14 = vld [vmem:[%s1306_s5 + $0x30] sm:$0xff] }
  0x17   :  { %459 = vmatpush.bf16.msra.mxu1 %v975_v21  ;;  %v1030_v15 = vld [vmem:[%s1302_s2] ss:$0 sm:$0xff]  ;;  %v1027_v16 = vld [vmem:[%s1306_s5 + $0x28] sm:$0xff] }
  0x18   :  { %472 = vmatpush.bf16.msra.mxu2 %v983_v22  ;;  %v1026_v20 = vld [vmem:[%s1306_s5 + $0x20] sm:$0xff]  ;;  %v1025_v22 = vld [vmem:[%s1306_s5 + $0x18] sm:$0xff] }
  0x19   :  { %485 = vmatpush.bf16.msra.mxu3 %v991_v23 }
  0x1a   :  { %447 = vmatpush.bf16.msra.mxu0 %v966_v24 }
  0x1b   :  { %460 = vmatpush.bf16.msra.mxu1 %v974_v25  ;;  %v1024_v25 = vld [vmem:[%s1306_s5 + $0x10] sm:$0xff] }
  0x1c   :  { %473 = vmatpush.bf16.msra.mxu2 %v982_v26 }
  0x1d   :  { %486 = vmatpush.bf16.msra.mxu3 %v990_v28 }
  0x1e   :  { %448 = vmatpush.bf16.msra.mxu0 %v965_v27 }
  0x1f   :  { %461 = vmatpush.bf16.msra.mxu1 %v973_v29 }
  0x20   :  { %474 = vmatpush.bf16.msra.mxu2 %v981_v34 }
  0x21   :  { %449 = vmatmul.bf16.vlgmr.msra.gmra.mxu0 %v34_v36  ;;  %487 = vmatpush.bf16.msra.mxu3 %v989_v38  ;;  %v1022_v38 = vld [vmem:[%s1306_s5] sm:$0xff] }
  0x22   :  { %493 = vmatpush.bf16.msrb.mxu0 %v1004_v32  ;;  %462 = vmatmul.bf16.vlgmr.msra.gmra.mxu1 %v35_v37  ;;  %v1023_v37 = vld [vmem:[%s1306_s5 + $0x8] sm:$0xff] }
  0x23   :  { %506 = vmatpush.bf16.msrb.mxu1 %v1012_v33  ;;  %475 = vmatmul.bf16.vlgmr.msra.gmra.mxu2 %v36_v43 }
  0x24   :  { %526 = vmatpush.bf16.msrb.mxu2 %v1013_v39  ;;  %488 = vmatmul.bf16.vlgmr.msra.gmra.mxu3 %v37_v44  ;;  %v1031_v39 = vld [vmem:[%s1304_s4] ss:$0 sm:$0xff] }
  0x25   :  { %602 = vmatpush.bf16.msrb.mxu3 %v1021_v63 }
  0x26   :  { %494 = vmatpush.bf16.msrb.mxu0 %v1003_v41 }
  0x27   :  { %507 = vmatpush.bf16.msrb.mxu1 %v1011_v42 }
  0x28   :  { %685 = vmatpush.bf16.msra.mxu2 %v1029_v11 }
  0x29   :  { %603 = vmatpush.bf16.msrb.mxu3 %v1020_v0 }
  0x2a   :  { %495 = vmatpush.bf16.msrb.mxu0 %v1002_v45  ;;  %v1032_v45 = vld [vmem:[%s1307_s6] ss:$0 sm:$0xff] }
  0x2b   :  { %508 = vmatpush.bf16.msrb.mxu1 %v1010_v46 }
  0x2c   :  { %686 = vmatpush.bf16.msra.mxu2 %v1028_v14 }
  0x2d   :  { %604 = vmatpush.bf16.msrb.mxu3 %v1019_v1 }
  0x2e   :  { %496 = vmatpush.bf16.msrb.mxu0 %v1001_v47 }
  0x2f   :  { %509 = vmatpush.bf16.msrb.mxu1 %v1009_v48 }
  0x30   :  { %687 = vmatpush.bf16.msra.mxu2 %v1027_v16 }
  0x31   :  { %605 = vmatpush.bf16.msrb.mxu3 %v1018_v2 }
  0x32   :  { %497 = vmatpush.bf16.msrb.mxu0 %v1000_v49 }
  0x33   :  { %510 = vmatpush.bf16.msrb.mxu1 %v1008_v50  ;;  %900 = vmatmul.msk.bf16.vlgmr.msrb.gmra.mxu2 %vm437_vm0, %v40_v54 }
  0x34   :  { %688 = vmatpush.bf16.msra.mxu2 %v1026_v20 }
  0x35   :  { %606 = vmatpush.bf16.msrb.mxu3 %v1017_v3 }
  0x36   :  { %498 = vmatpush.bf16.msrb.mxu0 %v999_v52 }
  0x37   :  { %511 = vmatpush.bf16.msrb.mxu1 %v1007_v53 }
  0x38   :  { %689 = vmatpush.bf16.msra.mxu2 %v1025_v22 }
  0x39   :  { %607 = vmatpush.bf16.msrb.mxu3 %v1016_v4 }
  0x3a   :  { %499 = vmatpush.bf16.msrb.mxu0 %v998_v55 }
  0x3b   :  { %512 = vmatpush.bf16.msrb.mxu1 %v1006_v56 }
  0x3c   :  { %690 = vmatpush.bf16.msra.mxu2 %v1024_v25 }
  0x3d   :  { %608 = vmatpush.bf16.msrb.mxu3 %v1015_v5 }
  0x3e   :  { %500 = vmatpush.bf16.msrb.mxu0 %v997_v57 }
  0x3f   :  { %513 = vmatpush.bf16.msrb.mxu1 %v1005_v58 }
  0x40   :  { %691 = vmatpush.bf16.msra.mxu2 %v1023_v37 }
  0x41   :  { %501 = vmatmul.bf16.vlgmr.msrb.gmra.mxu0 %v38_v61  ;;  %609 = vmatpush.bf16.msrb.mxu3 %v1014_v8 }
  0x42   :  { %514 = vmatmul.bf16.vlgmr.msrb.gmra.mxu1 %v39_v62 }
  0x44   :  { %692 = vmatpush.bf16.msra.mxu2 %v1022_v38 }
  0x9e   :  { %v450_v6 = vpop.f32.mrf.mxu0 }
  0x9f   :  { %v463_v7 = vpop.f32.mrf.mxu1  ;;  %v451_v17 = vadd.f32 %v1030_v15, %v450_v6 }
  0xa1   :  { %v464_v21 = vadd.f32 %v463_v7, %v451_v17 }
  0xa6   :  { %v452_v9 = vpop.f32.mrf.mxu0  ;;  %v476_v12 = vpop.f32.mrf.mxu2 }
  0xa7   :  { %v465_v10 = vpop.f32.mrf.mxu1  ;;  %v489_v13 = vpop.f32.mrf.mxu3  ;;  %v477_v23 = vadd.f32 %v476_v12, %v464_v21 }
  0xa9   :  { %v490_v26 = vadd.f32 %v489_v13, %v477_v23 }
  0xae   :  { %v478_v18 = vpop.f32.mrf.mxu2 }
  0xaf   :  { %v491_v19 = vpop.f32.mrf.mxu3 }
  0xb6   :  { %v528_v24 = vpop.f32.mrf.mxu2 }
  0xbe   :  { %v502_v27 = vpop.f32.mrf.mxu0  ;;  %v530_v31 = vpop.f32.mrf.mxu2 }
  0xbf   :  { %v515_v28 = vpop.f32.mrf.mxu1  ;;  %v503_v29 = vadd.f32 %v502_v27, %v490_v26 }
  0xc1   :  { %v516_v30 = vadd.f32 %v515_v28, %v503_v29 }
  0xc3   :  { %v529_v32 = vadd.f32 %v528_v24, %v516_v30 }
  0xc5   :  { %v532_v33 = vmax.f32 %v529_v32, 0.0 }
  0xc6   :  { %v504_v34 = vpop.f32.mrf.mxu0 }
  0xc7   :  { %v517_v35 = vpop.f32.mrf.mxu1  ;;  %v533_v36 = vpack.c.bf16 %v532_v33, %v532_v33 }
  0xc9   :  { %610 = vmatmul.bf16.vlgmr.msrb.gmra.mxu3 %v533_v36 }
 0x14c   :  { %v611_v40 = vpop.f32.mrf.mxu3 }
 0x14d   :  { %v612_v41 = vadd.f32 %v1031_v39, %v611_v40 }
 0x14f   :  { %v615_v42 = vmax.f32 %v612_v41, 0.0 }
 0x151   :  { %v616_v43 = vpack.c.bf16 %v615_v42, %v615_v42 }
 0x153   :  { %693 = vmatmul.bf16.vlgmr.msra.gmra.mxu2 %v616_v43 }
 0x154   :  { %v613_v44 = vpop.f32.mrf.mxu3 }
 0x1d6   :  { %v694_v46 = vpop.f32.mrf.mxu2 }
 0x1d7   :  { %v695_v47 = vadd.f32 %v1032_v45, %v694_v46 }
 0x1d9   :  { %v698_v48 = vpack.c.bf16 %v695_v47, %v695_v47 }
 0x1db   :  { %699 = vst [vmem:[%s1308_s7] sm:$0xf] %v698_v48 }
 0x1de   :  { %v696_v49 = vpop.f32.mrf.mxu2 }

</bundles_post_ra>
